<compile_context>
chip_gen: v6e
topology: v6e:2x2x1
jax: 0.10.0
libtpu: 0.0.40
codegen_flags: <defaults>
</compile_context>

<pallas_src>
import functools

import jax
import jax.numpy as jnp
from jax import lax
from jax.experimental import pallas as pl
from jax.experimental.pallas import tpu as pltpu

EPS = 1e-5
_LANE = 128
_SUBLANE = 8


def _round_up(v, m):
    return (v + m - 1) // m * m


def _default_vmem_limit():
    """Generation-aware scoped-VMEM limit (bytes)."""
    try:
        kind = jax.devices()[0].device_kind.lower()
    except Exception:
        kind = ""
    if "v2" in kind or "v3" in kind:
        return 12 * 1024 * 1024
    if "v7" in kind or "7x" in kind:      # 64 MiB physical per TensorCore
        return 44 * 1024 * 1024
    return 100 * 1024 * 1024              # v4/v5e/v6e: 128 MiB physical


# ---------------------------------------------------------------------------
# pl.Buffered(1) support probe (single-buffer constant-index operands).
# ---------------------------------------------------------------------------
_BUFFERED_OK = None


def _probe_copy_kernel(x_ref, o_ref):
    o_ref[...] = x_ref[...]


def _buffered_supported():
    global _BUFFERED_OK
    if _BUFFERED_OK is not None:
        return _BUFFERED_OK
    if not hasattr(pl, "Buffered"):
        _BUFFERED_OK = False
        return False
    try:
        spec = pl.BlockSpec((8, 128), lambda i: (0, 0),
                            pipeline_mode=pl.Buffered(buffer_count=1))
        fn = pl.pallas_call(
            _probe_copy_kernel,
            grid=(1,),
            in_specs=[spec],
            out_specs=pl.BlockSpec((8, 128), lambda i: (0, 0)),
            out_shape=jax.ShapeDtypeStruct((8, 128), jnp.float32),
        )
        jax.jit(fn).lower(jax.ShapeDtypeStruct((8, 128), jnp.float32))
        _BUFFERED_OK = True
    except Exception:
        _BUFFERED_OK = False
    return _BUFFERED_OK


def _spec(shape, index_map, *, single_buffer=False):
    """BlockSpec; optionally single-buffered (for constant-index operands)."""
    if single_buffer and _buffered_supported():
        try:
            return pl.BlockSpec(shape, index_map,
                                pipeline_mode=pl.Buffered(buffer_count=1))
        except Exception:
            pass
    return pl.BlockSpec(shape, index_map)


# ---------------------------------------------------------------------------
# Fully fused single-step kernel (whole padded batch resident in VMEM).
# ---------------------------------------------------------------------------
def _resblock_fused_kernel(x_ref, w1_ref, g1_ref, be1_ref, w2_ref, g2_ref, be2_ref,
                           o_ref, *, inv_b, valid_b, tile_b, need_mask):
    x = x_ref[...]
    h = jnp.dot(x.astype(w1_ref.dtype), w1_ref[...], preferred_element_type=jnp.float32)

    # bn1 (training mode): one-pass stats + fused scale/shift.
    # NOTE: E[x^2]-E[x]^2 in f32 can cancel for poorly-centered features; clamped at 0.
    mu1 = jnp.sum(h, axis=0, keepdims=True) * inv_b
    var1 = jnp.maximum(jnp.sum(h * h, axis=0, keepdims=True) * inv_b - mu1 * mu1, 0.0)
    s1 = g1_ref[...] * lax.rsqrt(var1 + EPS)
    t1 = be1_ref[...] - mu1 * s1
    h = jnp.maximum(h * s1 + t1, 0.0)

    if need_mask:  # zero padded batch rows so they cannot pollute bn2 statistics
        row = lax.broadcasted_iota(jnp.int32, (tile_b, 1), 0)
        h = jnp.where(row < valid_b, h, 0.0)

    z = jnp.dot(h.astype(w2_ref.dtype), w2_ref[...], preferred_element_type=jnp.float32)

    # bn2 + residual + relu
    mu2 = jnp.sum(z, axis=0, keepdims=True) * inv_b
    var2 = jnp.maximum(jnp.sum(z * z, axis=0, keepdims=True) * inv_b - mu2 * mu2, 0.0)
    s2 = g2_ref[...] * lax.rsqrt(var2 + EPS)
    t2 = be2_ref[...] - mu2 * s2
    o_ref[...] = jnp.maximum(x + z * s2 + t2, 0.0)


# ---------------------------------------------------------------------------
# Tiled three-pass pipeline (batch does not fit a single fused step).
# Stats are accumulated directly into the constant-index (VMEM-resident) output refs.
# ---------------------------------------------------------------------------
def _fc1_stats_kernel(x_ref, w1_ref, hpre_ref, stats1_ref):
    i = pl.program_id(0)
    h = jnp.dot(x_ref[...].astype(w1_ref.dtype), w1_ref[...],
                preferred_element_type=jnp.float32)
    hpre_ref[...] = h.astype(hpre_ref.dtype)

    @pl.when(i == 0)
    def _init():
        stats1_ref[...] = jnp.zeros_like(stats1_ref)

    stats1_ref[0:1, :] += jnp.sum(h, axis=0, keepdims=True)
    stats1_ref[1:2, :] += jnp.sum(h * h, axis=0, keepdims=True)


def _bn1_relu_fc2_stats_kernel(hpre_ref, stats1_ref, g1_ref, be1_ref, w2_ref,
                               zpre_ref, stats2_ref,
                               *, inv_b, valid_b, tile_b, need_mask):
    i = pl.program_id(0)
    mu1 = stats1_ref[0:1, :] * inv_b
    var1 = jnp.maximum(stats1_ref[1:2, :] * inv_b - mu1 * mu1, 0.0)
    s1 = g1_ref[...] * lax.rsqrt(var1 + EPS)
    t1 = be1_ref[...] - mu1 * s1
    h = jnp.maximum(hpre_ref[...].astype(jnp.float32) * s1 + t1, 0.0)

    if need_mask:
        row = i * tile_b + lax.broadcasted_iota(jnp.int32, (tile_b, 1), 0)
        h = jnp.where(row < valid_b, h, 0.0)

    z = jnp.dot(h.astype(w2_ref.dtype), w2_ref[...], preferred_element_type=jnp.float32)
    zpre_ref[...] = z.astype(zpre_ref.dtype)

    @pl.when(i == 0)
    def _init():
        stats2_ref[...] = jnp.zeros_like(stats2_ref)

    stats2_ref[0:1, :] += jnp.sum(z, axis=0, keepdims=True)
    stats2_ref[1:2, :] += jnp.sum(z * z, axis=0, keepdims=True)


def _bn2_residual_kernel(x_ref, zpre_ref, stats2_ref, g2_ref, be2_ref, o_ref, *, inv_b):
    mu2 = stats2_ref[0:1, :] * inv_b
    var2 = jnp.maximum(stats2_ref[1:2, :] * inv_b - mu2 * mu2, 0.0)
    s2 = g2_ref[...] * lax.rsqrt(var2 + EPS)
    t2 = be2_ref[...] - mu2 * s2
    o_ref[...] = jnp.maximum(x_ref[...] + zpre_ref[...].astype(jnp.float32) * s2 + t2, 0.0)


# ---------------------------------------------------------------------------
# Parameter preparation (hoisted out of the per-call path).
# ---------------------------------------------------------------------------
def prepare_params(params, *, matmul_dtype=None):
    """Pad / cast the weights and BN affines ONCE.

    Linear biases b1/b2 are intentionally dropped: training-mode BatchNorm subtracts the
    batch mean right after each Linear, so they cancel exactly.  (Not valid for eval-mode
    running statistics.)
    """
    if isinstance(params, dict) and params.get("prepared", False):
        return params
    w1_t = jnp.asarray(params["w1_t"], jnp.float32)   # (n, n_nodes)
    w2_t = jnp.asarray(params["w2_t"], jnp.float32)   # (n_nodes, n)
    n, n_nodes = w1_t.shape
    n_pad = _round_up(n, _LANE)
    nn_pad = _round_up(n_nodes, _LANE)

    if matmul_dtype is None:
        # bf16 MXU operands once the matmuls are wide enough to be MXU-bound;
        # f32 at small widths keeps results within 1e-4 of the reference.
        matmul_dtype = jnp.bfloat16 if min(n_pad, nn_pad) >= 512 else jnp.float32
    matmul_dtype = jnp.dtype(matmul_dtype)

    w1 = jnp.pad(w1_t, ((0, n_pad - n), (0, nn_pad - n_nodes))).astype(matmul_dtype)
    w2 = jnp.pad(w2_t, ((0, nn_pad - n_nodes), (0, n_pad - n))).astype(matmul_dtype)
    g1 = jnp.pad(jnp.asarray(params["g1"], jnp.float32).reshape(1, n_nodes),
                 ((0, 0), (0, nn_pad - n_nodes)), constant_values=1.0)
    be1 = jnp.pad(jnp.asarray(params["be1"], jnp.float32).reshape(1, n_nodes),
                  ((0, 0), (0, nn_pad - n_nodes)))
    g2 = jnp.pad(jnp.asarray(params["g2"], jnp.float32).reshape(1, n),
                 ((0, 0), (0, n_pad - n)), constant_values=1.0)
    be2 = jnp.pad(jnp.asarray(params["be2"], jnp.float32).reshape(1, n), ((0, 0), (0, n_pad - n)))

    return {"prepared": True, "n": n, "n_nodes": n_nodes, "n_pad": n_pad, "nn_pad": nn_pad,
            "matmul_dtype": matmul_dtype,
            "w1": w1, "w2": w2, "g1": g1, "be1": be1, "g2": g2, "be2": be2}


# ---------------------------------------------------------------------------
# Wrapper
# ---------------------------------------------------------------------------
def resblock_pallas(x, params, *, tile_b=None, intermediate_dtype=jnp.bfloat16,
                    vmem_limit_bytes=None):
    """x: (B, n) f32.  params: raw dict (see init_params) or prepare_params() output."""
    prep = prepare_params(params)
    B, n = x.shape
    assert n == prep["n"], "feature dim mismatch"
    n_pad, nn_pad = prep["n_pad"], prep["nn_pad"]
    w1, w2 = prep["w1"], prep["w2"]
    g1, be1, g2, be2 = prep["g1"], prep["be1"], prep["g2"], prep["be2"]
    f32 = jnp.float32

    itm_dtype = jnp.dtype(intermediate_dtype)
    itm = itm_dtype.itemsize
    sub = _SUBLANE if itm >= 4 else _SUBLANE * (4 // itm)   # 8 for f32, 16 for bf16

    if vmem_limit_bytes is None:
        vmem_limit_bytes = _default_vmem_limit()

    # ---- VMEM-derived path selection (generation-aware) ---------------------------------
    w_bytes = (n_pad * nn_pad + nn_pad * n_pad) * prep["matmul_dtype"].itemsize
    budget = int(0.8 * vmem_limit_bytes) - 2 * w_bytes - (1 << 20)
    budget = max(0, budget)
    fused_per_row = 4 * (4 * n_pad + 2 * nn_pad)            # x, out(x2), h, z temporaries
    max_fused_rows = budget // fused_per_row // _SUBLANE * _SUBLANE
    tiled_per_row = 16 * n_pad + (2 * itm + 4) * (n_pad + nn_pad)
    tile_cap = max(sub, min(1024, budget // tiled_per_row // sub * sub))

    B_min = _round_up(B, sub)
    if tile_b is None:
        tile_b = B_min if B_min <= max_fused_rows else tile_cap
    tile_b = min(max(sub, _round_up(int(tile_b), sub)), B_min)
    B_pad = _round_up(B, tile_b)
    num_tiles = B_pad // tile_b
    need_mask = B_pad != B
    inv_b = 1.0 / B

    # Pad x only when needed (skip the extra HBM copy for already-aligned shapes).
    if (B_pad, n_pad) != (B, n):
        xp = jnp.pad(x.astype(f32), ((0, B_pad - B), (0, n_pad - n)))
    else:
        xp = x.astype(f32)

    cp_reduce = pltpu.CompilerParams(
        dimension_semantics=("arbitrary",), vmem_limit_bytes=vmem_limit_bytes)
    cp_parallel = pltpu.CompilerParams(
        dimension_semantics=("parallel",), vmem_limit_bytes=vmem_limit_bytes)

    if num_tiles == 1:
        # Whole (padded) batch fits one step: fully fused, no intermediate HBM round-trips.
        fused = functools.partial(_resblock_fused_kernel, inv_b=inv_b, valid_b=B,
                                  tile_b=B_pad, need_mask=need_mask)
        outp = pl.pallas_call(
            fused,
            grid=(1,),
            in_specs=[
                _spec((B_pad, n_pad), lambda i: (0, 0), single_buffer=True),    # x
                _spec((n_pad, nn_pad), lambda i: (0, 0), single_buffer=True),   # w1
                _spec((1, nn_pad), lambda i: (0, 0), single_buffer=True),       # g1
                _spec((1, nn_pad), lambda i: (0, 0), single_buffer=True),       # be1
                _spec((nn_pad, n_pad), lambda i: (0, 0), single_buffer=True),   # w2
                _spec((1, n_pad), lambda i: (0, 0), single_buffer=True),        # g2
                _spec((1, n_pad), lambda i: (0, 0), single_buffer=True),        # be2
            ],
            out_specs=pl.BlockSpec((B_pad, n_pad), lambda i: (0, 0)),
            out_shape=jax.ShapeDtypeStruct((B_pad, n_pad), f32),
            compiler_params=cp_reduce,
        )(xp, w1, g1, be1, w2, g2, be2)
        return outp if (B_pad, n_pad) == (B, n) else outp[:B, :n]

    # ---- Pass 1: h_pre = x @ W1, accumulate per-feature sum / sumsq of h_pre ----
    hpre, stats1 = pl.pallas_call(
        _fc1_stats_kernel,
        grid=(num_tiles,),
        in_specs=[
            pl.BlockSpec((tile_b, n_pad), lambda i: (i, 0)),                    # x
            _spec((n_pad, nn_pad), lambda i: (0, 0), single_buffer=True),       # w1
        ],
        out_specs=(
            pl.BlockSpec((tile_b, nn_pad), lambda i: (i, 0)),                   # h_pre
            pl.BlockSpec((2, nn_pad), lambda i: (0, 0)),                        # stats1 (resident)
        ),
        out_shape=(
            jax.ShapeDtypeStruct((B_pad, nn_pad), itm_dtype),
            jax.ShapeDtypeStruct((2, nn_pad), f32),
        ),
        compiler_params=cp_reduce,
    )(xp, w1)

    # ---- Pass 2: bn1 + relu + fc2, accumulate sum / sumsq of z_pre ----
    k2 = functools.partial(_bn1_relu_fc2_stats_kernel, inv_b=inv_b, valid_b=B,
                           tile_b=tile_b, need_mask=need_mask)
    zpre, stats2 = pl.pallas_call(
        k2,
        grid=(num_tiles,),
        in_specs=[
            pl.BlockSpec((tile_b, nn_pad), lambda i: (i, 0)),                   # h_pre
            _spec((2, nn_pad), lambda i: (0, 0), single_buffer=True),           # stats1
            _spec((1, nn_pad), lambda i: (0, 0), single_buffer=True),           # g1
            _spec((1, nn_pad), lambda i: (0, 0), single_buffer=True),           # be1
            _spec((nn_pad, n_pad), lambda i: (0, 0), single_buffer=True),       # w2
        ],
        out_specs=(
            pl.BlockSpec((tile_b, n_pad), lambda i: (i, 0)),                    # z_pre
            pl.BlockSpec((2, n_pad), lambda i: (0, 0)),                         # stats2 (resident)
        ),
        out_shape=(
            jax.ShapeDtypeStruct((B_pad, n_pad), itm_dtype),
            jax.ShapeDtypeStruct((2, n_pad), f32),
        ),
        compiler_params=cp_reduce,
    )(hpre, stats1, g1, be1, w2)

    # ---- Pass 3: bn2 + residual + relu (embarrassingly parallel over batch tiles) ----
    k3 = functools.partial(_bn2_residual_kernel, inv_b=inv_b)
    outp = pl.pallas_call(
        k3,
        grid=(num_tiles,),
        in_specs=[
            pl.BlockSpec((tile_b, n_pad), lambda i: (i, 0)),                    # x
            pl.BlockSpec((tile_b, n_pad), lambda i: (i, 0)),                    # z_pre
            _spec((2, n_pad), lambda i: (0, 0), single_buffer=True),            # stats2
            _spec((1, n_pad), lambda i: (0, 0), single_buffer=True),            # g2
            _spec((1, n_pad), lambda i: (0, 0), single_buffer=True),            # be2
        ],
        out_specs=pl.BlockSpec((tile_b, n_pad), lambda i: (i, 0)),
        out_shape=jax.ShapeDtypeStruct((B_pad, n_pad), f32),
        compiler_params=cp_parallel,
    )(xp, zpre, stats2, g2, be2)

    return outp if (B_pad, n_pad) == (B, n) else outp[:B, :n]


# ---------------------------------------------------------------------------
# Pure-JAX reference of the exact PyTorch forward (with Linear biases).
# ---------------------------------------------------------------------------
def resblock_ref(x, params):
    h = x @ params["w1_t"] + params["b1"]
    mu1 = jnp.mean(h, axis=0, keepdims=True)
    var1 = jnp.mean((h - mu1) ** 2, axis=0, keepdims=True)
    h = (h - mu1) / jnp.sqrt(var1 + EPS) * params["g1"] + params["be1"]
    h = jnp.maximum(h, 0.0)
    z = h @ params["w2_t"] + params["b2"]
    mu2 = jnp.mean(z, axis=0, keepdims=True)
    var2 = jnp.mean((z - mu2) ** 2, axis=0, keepdims=True)
    z = (z - mu2) / jnp.sqrt(var2 + EPS) * params["g2"] + params["be2"]
    return jnp.maximum(x + z, 0.0)


def init_params(key, n, n_nodes):
    ks = jax.random.split(key, 8)
    # nn.Linear(n, n_nodes).weight has shape (n_nodes, n); store transposed for x @ W.
    w1 = jax.random.uniform(ks[0], (n_nodes, n), jnp.float32, -1.0, 1.0) / jnp.sqrt(n)
    b1 = jax.random.uniform(ks[1], (n_nodes,), jnp.float32, -1.0, 1.0) / jnp.sqrt(n)
    w2 = jax.random.uniform(ks[2], (n, n_nodes), jnp.float32, -1.0, 1.0) / jnp.sqrt(n_nodes)
    b2 = jax.random.uniform(ks[3], (n,), jnp.float32, -1.0, 1.0) / jnp.sqrt(n_nodes)
    g1 = 1.0 + 0.1 * jax.random.normal(ks[4], (n_nodes,), jnp.float32)
    be1 = 0.1 * jax.random.normal(ks[5], (n_nodes,), jnp.float32)
    g2 = 1.0 + 0.1 * jax.random.normal(ks[6], (n,), jnp.float32)
    be2 = 0.1 * jax.random.normal(ks[7], (n,), jnp.float32)
    return {
        "w1_t": w1.T, "b1": b1.reshape(1, n_nodes),
        "g1": g1.reshape(1, n_nodes), "be1": be1.reshape(1, n_nodes),
        "w2_t": w2.T, "b2": b2.reshape(1, n),
        "g2": g2.reshape(1, n), "be2": be2.reshape(1, n),
    }


if __name__ == "__main__":
    B, n, n_nodes = 64, 32, 128
    key = jax.random.PRNGKey(0)
    kx, kx2, kp = jax.random.split(key, 3)
    x = jax.random.normal(kx, (B, n), jnp.float32)
    params = init_params(kp, n, n_nodes)
    prep = prepare_params(params)          # hoisted: pad / cast parameters once

    ref = jax.block_until_ready(resblock_ref(x, params))

    # 1) Fused single-kernel fast path (VMEM-derived threshold covers B=64).
    out_fused = jax.block_until_ready(resblock_pallas(x, prep))
    assert out_fused.shape == (B, n) and out_fused.dtype == jnp.float32
    assert jnp.allclose(out_fused, ref, atol=1e-4, rtol=1e-4), "fused path mismatch"

    # 2) Tiled 3-pass path with exact f32 intermediates (cross-tile BN stats accumulation).
    out_tiled = jax.block_until_ready(
        resblock_pallas(x, prep, tile_b=16, intermediate_dtype=jnp.float32))
    assert jnp.allclose(out_tiled, ref, atol=1e-4, rtol=1e-4), "tiled f32 path mismatch"

    # 3) Tiled 3-pass path with bf16 HBM intermediates (default): ~30% less HBM traffic,
    #    slightly looser tolerance from the bf16 rounding of h_pre / z_pre.
    out_bf16 = jax.block_until_ready(resblock_pallas(x, prep, tile_b=16))
    assert jnp.allclose(out_bf16, ref, atol=5e-2, rtol=5e-2), "tiled bf16 path mismatch"

    # 4) Non-multiple batch exercises the padding + masking path through the fused kernel.
    x2 = jax.random.normal(kx2, (50, n), jnp.float32)
    ref2 = resblock_ref(x2, params)
    out2 = jax.block_until_ready(resblock_pallas(x2, prep))
    assert out2.shape == (50, n)
    assert jnp.allclose(out2, ref2, atol=1e-4, rtol=1e-4), "masked fused path mismatch"

    print("KERNEL_OK")
</pallas_src>

<mosaic_0001>
module attributes {stable_mosaic.version = 11 : i64} {
  func.func @_resblock_fused_kernel(%arg0: i32, %arg1: memref<64x128xf32, #tpu.memory_space<vmem>>, %arg2: memref<128x128xf32, #tpu.memory_space<vmem>>, %arg3: memref<1x128xf32, #tpu.memory_space<vmem>>, %arg4: memref<1x128xf32, #tpu.memory_space<vmem>>, %arg5: memref<128x128xf32, #tpu.memory_space<vmem>>, %arg6: memref<1x128xf32, #tpu.memory_space<vmem>>, %arg7: memref<1x128xf32, #tpu.memory_space<vmem>>, %arg8: memref<64x128xf32, #tpu.memory_space<vmem>>) attributes {dimension_semantics = [#tpu.dimension_semantics<arbitrary>], iteration_bounds = array<i64: 1>, scalar_prefetch = 0 : i64, scratch_operands = 0 : i64, tpu.core_type = #tpu.core_type<tc>, window_params = [{pipeline_mode = #tpu.pipeline_mode<synchronous>, transform_indices = @transform_0, window_bounds = array<i64: 64, 128>}, {pipeline_mode = #tpu.pipeline_mode<synchronous>, transform_indices = @transform_1, window_bounds = array<i64: 128, 128>}, {pipeline_mode = #tpu.pipeline_mode<synchronous>, transform_indices = @transform_2, window_bounds = array<i64: 1, 128>}, {pipeline_mode = #tpu.pipeline_mode<synchronous>, transform_indices = @transform_3, window_bounds = array<i64: 1, 128>}, {pipeline_mode = #tpu.pipeline_mode<synchronous>, transform_indices = @transform_4, window_bounds = array<i64: 128, 128>}, {pipeline_mode = #tpu.pipeline_mode<synchronous>, transform_indices = @transform_5, window_bounds = array<i64: 1, 128>}, {pipeline_mode = #tpu.pipeline_mode<synchronous>, transform_indices = @transform_6, window_bounds = array<i64: 1, 128>}, {pipeline_mode = #tpu.pipeline_mode<synchronous>, transform_indices = @transform_7, window_bounds = array<i64: 64, 128>}]} {
    %c0 = arith.constant 0 : index
    %c0_0 = arith.constant 0 : index
    %0 = vector.load %arg1[%c0, %c0_0] : memref<64x128xf32, #tpu.memory_space<vmem>>, vector<64x128xf32>
    %c0_1 = arith.constant 0 : index
    %c0_2 = arith.constant 0 : index
    %1 = vector.load %arg2[%c0_1, %c0_2] : memref<128x128xf32, #tpu.memory_space<vmem>>, vector<128x128xf32>
    %cst = arith.constant dense<0.000000e+00> : vector<64x128xf32>
    %2 = tpu.matmul %0, %1, %cst {dimension_numbers = #tpu.dot_dimension_numbers<[1], [0], [0], [1], [0, 0, 1, 1], [], []>} : vector<64x128xf32>, vector<128x128xf32>, vector<64x128xf32> -> vector<64x128xf32>
    %cst_3 = arith.constant dense<0.000000e+00> : vector<128xf32>
    %3 = vector.multi_reduction <add>, %2, %cst_3 [0] : vector<64x128xf32> to vector<128xf32>
    %4 = vector.shape_cast %3 : vector<128xf32> to vector<1x128xf32>
    %cst_4 = arith.constant 1.562500e-02 : f32
    %5 = vector.broadcast %cst_4 : f32 to vector<1x128xf32>
    %6 = arith.mulf %4, %5 : vector<1x128xf32>
    %7 = arith.mulf %2, %2 : vector<64x128xf32>
    %cst_5 = arith.constant dense<0.000000e+00> : vector<128xf32>
    %8 = vector.multi_reduction <add>, %7, %cst_5 [0] : vector<64x128xf32> to vector<128xf32>
    %9 = vector.shape_cast %8 : vector<128xf32> to vector<1x128xf32>
    %cst_6 = arith.constant 1.562500e-02 : f32
    %10 = vector.broadcast %cst_6 : f32 to vector<1x128xf32>
    %11 = arith.mulf %9, %10 : vector<1x128xf32>
    %12 = arith.mulf %6, %6 : vector<1x128xf32>
    %13 = arith.subf %11, %12 : vector<1x128xf32>
    %cst_7 = arith.constant 0.000000e+00 : f32
    %14 = vector.broadcast %cst_7 : f32 to vector<1x128xf32>
    %15 = arith.maximumf %13, %14 : vector<1x128xf32>
    %c0_8 = arith.constant 0 : index
    %c0_9 = arith.constant 0 : index
    %16 = vector.load %arg3[%c0_8, %c0_9] : memref<1x128xf32, #tpu.memory_space<vmem>>, vector<1x128xf32>
    %cst_10 = arith.constant 9.99999974E-6 : f32
    %17 = vector.broadcast %cst_10 : f32 to vector<1x128xf32>
    %18 = arith.addf %15, %17 : vector<1x128xf32>
    %19 = math.rsqrt %18 : vector<1x128xf32>
    %20 = arith.mulf %16, %19 : vector<1x128xf32>
    %c0_11 = arith.constant 0 : index
    %c0_12 = arith.constant 0 : index
    %21 = vector.load %arg4[%c0_11, %c0_12] : memref<1x128xf32, #tpu.memory_space<vmem>>, vector<1x128xf32>
    %22 = arith.mulf %6, %20 : vector<1x128xf32>
    %23 = arith.subf %21, %22 : vector<1x128xf32>
    %24 = vector.broadcast %20 : vector<1x128xf32> to vector<64x128xf32>
    %25 = arith.mulf %2, %24 : vector<64x128xf32>
    %26 = vector.broadcast %23 : vector<1x128xf32> to vector<64x128xf32>
    %27 = arith.addf %25, %26 : vector<64x128xf32>
    %cst_13 = arith.constant 0.000000e+00 : f32
    %28 = vector.broadcast %cst_13 : f32 to vector<64x128xf32>
    %29 = arith.maximumf %27, %28 : vector<64x128xf32>
    %c0_14 = arith.constant 0 : index
    %c0_15 = arith.constant 0 : index
    %30 = vector.load %arg5[%c0_14, %c0_15] : memref<128x128xf32, #tpu.memory_space<vmem>>, vector<128x128xf32>
    %cst_16 = arith.constant dense<0.000000e+00> : vector<64x128xf32>
    %31 = tpu.matmul %29, %30, %cst_16 {dimension_numbers = #tpu.dot_dimension_numbers<[1], [0], [0], [1], [0, 0, 1, 1], [], []>} : vector<64x128xf32>, vector<128x128xf32>, vector<64x128xf32> -> vector<64x128xf32>
    %cst_17 = arith.constant dense<0.000000e+00> : vector<128xf32>
    %32 = vector.multi_reduction <add>, %31, %cst_17 [0] : vector<64x128xf32> to vector<128xf32>
    %33 = vector.shape_cast %32 : vector<128xf32> to vector<1x128xf32>
    %cst_18 = arith.constant 1.562500e-02 : f32
    %34 = vector.broadcast %cst_18 : f32 to vector<1x128xf32>
    %35 = arith.mulf %33, %34 : vector<1x128xf32>
    %36 = arith.mulf %31, %31 : vector<64x128xf32>
    %cst_19 = arith.constant dense<0.000000e+00> : vector<128xf32>
    %37 = vector.multi_reduction <add>, %36, %cst_19 [0] : vector<64x128xf32> to vector<128xf32>
    %38 = vector.shape_cast %37 : vector<128xf32> to vector<1x128xf32>
    %cst_20 = arith.constant 1.562500e-02 : f32
    %39 = vector.broadcast %cst_20 : f32 to vector<1x128xf32>
    %40 = arith.mulf %38, %39 : vector<1x128xf32>
    %41 = arith.mulf %35, %35 : vector<1x128xf32>
    %42 = arith.subf %40, %41 : vector<1x128xf32>
    %cst_21 = arith.constant 0.000000e+00 : f32
    %43 = vector.broadcast %cst_21 : f32 to vector<1x128xf32>
    %44 = arith.maximumf %42, %43 : vector<1x128xf32>
    %c0_22 = arith.constant 0 : index
    %c0_23 = arith.constant 0 : index
    %45 = vector.load %arg6[%c0_22, %c0_23] : memref<1x128xf32, #tpu.memory_space<vmem>>, vector<1x128xf32>
    %cst_24 = arith.constant 9.99999974E-6 : f32
    %46 = vector.broadcast %cst_24 : f32 to vector<1x128xf32>
    %47 = arith.addf %44, %46 : vector<1x128xf32>
    %48 = math.rsqrt %47 : vector<1x128xf32>
    %49 = arith.mulf %45, %48 : vector<1x128xf32>
    %c0_25 = arith.constant 0 : index
    %c0_26 = arith.constant 0 : index
    %50 = vector.load %arg7[%c0_25, %c0_26] : memref<1x128xf32, #tpu.memory_space<vmem>>, vector<1x128xf32>
    %51 = arith.mulf %35, %49 : vector<1x128xf32>
    %52 = arith.subf %50, %51 : vector<1x128xf32>
    %53 = vector.broadcast %49 : vector<1x128xf32> to vector<64x128xf32>
    %54 = arith.mulf %31, %53 : vector<64x128xf32>
    %55 = arith.addf %0, %54 : vector<64x128xf32>
    %56 = vector.broadcast %52 : vector<1x128xf32> to vector<64x128xf32>
    %57 = arith.addf %55, %56 : vector<64x128xf32>
    %cst_27 = arith.constant 0.000000e+00 : f32
    %58 = vector.broadcast %cst_27 : f32 to vector<64x128xf32>
    %59 = arith.maximumf %57, %58 : vector<64x128xf32>
    %c0_28 = arith.constant 0 : index
    %c0_29 = arith.constant 0 : index
    %60 = vector.load %arg8[%c0_28, %c0_29] : memref<64x128xf32, #tpu.memory_space<vmem>>, vector<64x128xf32>
    tpu.vector_store %arg8[%c0_28, %c0_29], %59 {strides = array<i32>} : memref<64x128xf32, #tpu.memory_space<vmem>>, vector<64x128xf32>,
    return
  }
  func.func @transform_0(%arg0: i32) -> (i32, i32) {
    %c0_i32 = arith.constant 0 : i32
    %c0_i32_0 = arith.constant 0 : i32
    %c0_i32_1 = arith.constant 0 : i32
    return %c0_i32, %c0_i32_0 : i32, i32
  }
  func.func @transform_1(%arg0: i32) -> (i32, i32) {
    %c0_i32 = arith.constant 0 : i32
    %c0_i32_0 = arith.constant 0 : i32
    %c0_i32_1 = arith.constant 0 : i32
    return %c0_i32, %c0_i32_0 : i32, i32
  }
  func.func @transform_2(%arg0: i32) -> (i32, i32) {
    %c0_i32 = arith.constant 0 : i32
    %c0_i32_0 = arith.constant 0 : i32
    %c0_i32_1 = arith.constant 0 : i32
    return %c0_i32, %c0_i32_0 : i32, i32
  }
  func.func @transform_3(%arg0: i32) -> (i32, i32) {
    %c0_i32 = arith.constant 0 : i32
    %c0_i32_0 = arith.constant 0 : i32
    %c0_i32_1 = arith.constant 0 : i32
    return %c0_i32, %c0_i32_0 : i32, i32
  }
  func.func @transform_4(%arg0: i32) -> (i32, i32) {
    %c0_i32 = arith.constant 0 : i32
    %c0_i32_0 = arith.constant 0 : i32
    %c0_i32_1 = arith.constant 0 : i32
    return %c0_i32, %c0_i32_0 : i32, i32
  }
  func.func @transform_5(%arg0: i32) -> (i32, i32) {
    %c0_i32 = arith.constant 0 : i32
    %c0_i32_0 = arith.constant 0 : i32
    %c0_i32_1 = arith.constant 0 : i32
    return %c0_i32, %c0_i32_0 : i32, i32
  }
  func.func @transform_6(%arg0: i32) -> (i32, i32) {
    %c0_i32 = arith.constant 0 : i32
    %c0_i32_0 = arith.constant 0 : i32
    %c0_i32_1 = arith.constant 0 : i32
    return %c0_i32, %c0_i32_0 : i32, i32
  }
  func.func @transform_7(%arg0: i32) -> (i32, i32) {
    %c0_i32 = arith.constant 0 : i32
    %c0_i32_0 = arith.constant 0 : i32
    %c0_i32_1 = arith.constant 0 : i32
    return %c0_i32, %c0_i32_0 : i32, i32
  }
}

</mosaic_0001>

<bundles_post_ra>
// kernel: tpu_custom_call.1
= control target key start
LH: loop header
LB: loop body
LE: loop exit
PB: predicated region body
PF: predicated region fallthrough
CT: control target
= control target key end

     0   :  { %12 = vsyncpa [#allocation3], 0  ;;  %s886_s0 = inlined_call_operand.hbm [shape: f32[64,128], index: 0, kind: input, shape index: {}]   ;;  %s887_s1 = inlined_call_operand.hbm [shape: f32[128,128], index: 1, kind: input, shape index: {}]   ;;  %s888_s2 = inlined_call_operand.vmem [shape: f32[1,128], index: 2, kind: input, shape index: {}]   ;;  %s889_s3 = inlined_call_operand.vmem [shape: f32[1,128], index: 3, kind: input, shape index: {}]   ;;  %s890_s4 = inlined_call_operand.hbm [shape: f32[128,128], index: 4, kind: input, shape index: {}]   ;;  %s891_s5 = inlined_call_operand.vmem [shape: f32[1,128], index: 5, kind: input, shape index: {}]   ;;  %s892_s6 = inlined_call_operand.vmem [shape: f32[1,128], index: 6, kind: input, shape index: {}]   ;;  %s893_s7 = inlined_call_operand.hbm [shape: f32[64,128], index: 7, kind: output, shape index: {}]  }
   0x1   :  { %13 = vsyncpa [#allocation6], 0 }
   0x2   :  { %14 = vsyncpa [#allocation4], 0  ;;  %s748_s24 = smov [#allocation5]   ;;  %s749_s26 = smov [#allocation2]  }
   0x3   :  { %s32_s25 = sshll.u32 %s748_s24, 4  ;;  %s20_s27 = sshll.u32 %s749_s26, 4  ;;  %s33_s25 = int_to_ptr.vmem [resolvable:$true] %s32_s25  ;;  %s21_s27 = int_to_ptr.vmem [resolvable:$true] %s20_s27 }
   0x4   :  { %s670_s28 = scalar_lea.vmem %s33_s25, 2048  ;;  %p675_p1 = scmp.lt.s32.totalorder %s33_s25, %s33_s25 }
   0x5   :  { %p671_p0 = scmp.ne.s32.totalorder %s33_s25, %s670_s28  ;;  %p676_p2 = scmp.lt.s32.totalorder %s670_s28, %s670_s28 }
   0x7   :  { %p677_p3 = por %p676_p2, %p675_p1 }
   0x9   :  { %p678_p4 = pnand %p677_p3, %p671_p0 }
   0xb   :  { %681 = shalt.err (!%p678_p4)
}
   0xc   :  { %s750_s29 = smov 128   ;;  %s751_s30 = smov 8  }
   0xd   :  { %38 = dma.hbm_to_vmem [thread:$0]  %s887_s1, 2048, %s33_s25, [#allocation6], %s750_s29, %s750_s29, %s751_s30  }
   0xe   :  { %s690_s10 = scalar_lea.vmem %s21_s27, 1024  ;;  %p695_p6 = scmp.lt.s32.totalorder %s21_s27, %s21_s27 }
   0xf   :  { %p691_p5 = scmp.ne.s32.totalorder %s21_s27, %s690_s10  ;;  %p696_p7 = scmp.lt.s32.totalorder %s690_s10, %s690_s10 }
  0x11   :  { %p697_p8 = por %p696_p7, %p695_p6 }
  0x13   :  { %p698_p9 = pnand %p697_p8, %p691_p5 }
  0x15   :  { %701 = shalt.err (!%p698_p9)
}
  0x16   :  { %26 = dma.hbm_to_vmem [thread:$0]  %s886_s0, 1024, %s21_s27, [#allocation3], %s750_s29, %s750_s29, %s751_s30  }
  0x17   :  { %s752_s13 = smov [#allocation7]  }
  0x18   :  { %s48_s14 = sshll.u32 %s752_s13, 4  ;;  %s49_s14 = int_to_ptr.vmem [resolvable:$true] %s48_s14 }
  0x19   :  { %s710_s15 = scalar_lea.vmem %s49_s14, 2048  ;;  %p715_p11 = scmp.lt.s32.totalorder %s49_s14, %s49_s14 }
  0x1a   :  { %p711_p10 = scmp.ne.s32.totalorder %s49_s14, %s710_s15  ;;  %p716_p12 = scmp.lt.s32.totalorder %s710_s15, %s710_s15 }
  0x1c   :  { %p717_p13 = por %p716_p12, %p715_p11 }
  0x1e   :  { %p718_p0 = pnand %p717_p13, %p711_p10 }
  0x20   :  { %721 = shalt.err (!%p718_p0)
}
  0x21   :  { %54 = dma.hbm_to_vmem [thread:$0]  %s890_s4, 2048, %s49_s14, [#allocation6], %s750_s29, %s750_s29, %s751_s30  }
  0x22   :  { %742 = dma.done.wait [#allocation3], 1024  }
  0x23   :  { %743 = vsyncadd [#allocation3], 4294966272 }
  0x24   :  { %744 = dma.done.wait [#allocation6], 4096  }
  0x25   :  { %745 = vsyncadd [#allocation6], 4294963200  ;;  %v91_v0 = vld [vmem:[#allocation5 + $0x78] sm:$0xff]  ;;  %v90_v1 = vld [vmem:[#allocation5 + $0x70] sm:$0xff] }
  0x26   :  { %564 = vmatprep.subr.mxu0 %v91_v0  ;;  %v89_v2 = vld [vmem:[#allocation5 + $0x68] sm:$0xff]  ;;  %v88_v3 = vld [vmem:[#allocation5 + $0x60] sm:$0xff]  ;;  %v87_v5 = vld [vmem:[#allocation5 + $0x58] sm:$0xff] }
  0x27   :  { %565 = vmatpush3.msra.mxu0 %v91_v0  ;;  %v812_v4 = vld [vmem:[#allocation2] sm:$0xff]  ;;  %v86_v6 = vld [vmem:[#allocation5 + $0x50] sm:$0xff]  ;;  %v85_v7 = vld [vmem:[#allocation5 + $0x48] sm:$0xff] }
  0x28   :  { %566 = vmatprep.subr.mxu0 %v90_v1  ;;  %596 = vmatprep.mubr.f32.mxu0 %v812_v4  ;;  %v84_v8 = vld [vmem:[#allocation5 + $0x40] sm:$0xff]  ;;  %v83_v9 = vld [vmem:[#allocation5 + $0x38] sm:$0xff]  ;;  %v82_v10 = vld [vmem:[#allocation5 + $0x30] sm:$0xff] }
  0x29   :  { %567 = vmatpush3.msra.mxu0 %v90_v1  ;;  %v81_v11 = vld [vmem:[#allocation5 + $0x28] sm:$0xff]  ;;  %v80_v12 = vld [vmem:[#allocation5 + $0x20] sm:$0xff]  ;;  %v79_v13 = vld [vmem:[#allocation5 + $0x18] sm:$0xff] }
  0x2a   :  { %568 = vmatprep.subr.mxu0 %v89_v2  ;;  %v78_v14 = vld [vmem:[#allocation5 + $0x10] sm:$0xff]  ;;  %v77_v15 = vld [vmem:[#allocation5 + $0x8] sm:$0xff]  ;;  %v76_v16 = vld [vmem:[#allocation5] sm:$0xff] }
  0x2b   :  { %569 = vmatpush3.msra.mxu0 %v89_v2  ;;  %v815_v17 = vld [vmem:[#allocation2 + $0x8] sm:$0xff]  ;;  %v817_v18 = vld [vmem:[#allocation2 + $0x10] sm:$0xff]  ;;  %v821_v19 = vld [vmem:[#allocation2 + $0x18] sm:$0xff] }
  0x2c   :  { %570 = vmatprep.subr.mxu0 %v88_v3  ;;  %v823_v20 = vld [vmem:[#allocation2 + $0x20] sm:$0xff]  ;;  %v827_v21 = vld [vmem:[#allocation2 + $0x28] sm:$0xff]  ;;  %v829_v22 = vld [vmem:[#allocation2 + $0x30] sm:$0xff] }
  0x2d   :  { %571 = vmatpush3.msra.mxu0 %v88_v3  ;;  %v833_v23 = vld [vmem:[#allocation2 + $0x38] sm:$0xff]  ;;  %v293_v25 = vld [vmem:[#allocation7 + $0x70] sm:$0xff]  ;;  %v292_v26 = vld [vmem:[#allocation7 + $0x68] sm:$0xff] }
  0x2e   :  { %572 = vmatprep.subr.mxu0 %v87_v5  ;;  %v294_v24 = vld [vmem:[#allocation7 + $0x78] sm:$0xff]  ;;  %v291_v27 = vld [vmem:[#allocation7 + $0x60] sm:$0xff]  ;;  %v289_v29 = vld [vmem:[#allocation7 + $0x50] sm:$0xff] }
  0x2f   :  { %573 = vmatpush3.msra.mxu0 %v87_v5  ;;  %608 = vmatprep.subr.mxu1 %v294_v24  ;;  %v290_v28 = vld [vmem:[#allocation7 + $0x58] sm:$0xff]  ;;  %v288_v30 = vld [vmem:[#allocation7 + $0x48] sm:$0xff]  ;;  %v287_v31 = vld [vmem:[#allocation7 + $0x40] sm:$0xff] }
  0x30   :  { %574 = vmatprep.subr.mxu0 %v86_v6  ;;  %609 = vmatpush3.msra.mxu1 %v294_v24  ;;  %v286_v32 = vld [vmem:[#allocation7 + $0x38] sm:$0xff]  ;;  %v285_v33 = vld [vmem:[#allocation7 + $0x30] sm:$0xff]  ;;  %v284_v34 = vld [vmem:[#allocation7 + $0x28] sm:$0xff] }
  0x31   :  { %575 = vmatpush3.msra.mxu0 %v86_v6  ;;  %610 = vmatprep.subr.mxu1 %v293_v25  ;;  %v283_v35 = vld [vmem:[#allocation7 + $0x20] sm:$0xff]  ;;  %v282_v36 = vld [vmem:[#allocation7 + $0x18] sm:$0xff]  ;;  %v281_v37 = vld [vmem:[#allocation7 + $0x10] sm:$0xff] }
  0x32   :  { %576 = vmatprep.subr.mxu0 %v85_v7  ;;  %611 = vmatpush3.msra.mxu1 %v293_v25  ;;  %v280_v38 = vld [vmem:[#allocation7 + $0x8] sm:$0xff]  ;;  %v279_v39 = vld [vmem:[#allocation7] sm:$0xff] }
  0x33   :  { %577 = vmatpush3.msra.mxu0 %v85_v7  ;;  %612 = vmatprep.subr.mxu1 %v292_v26 }
  0x34   :  { %578 = vmatprep.subr.mxu0 %v84_v8  ;;  %613 = vmatpush3.msra.mxu1 %v292_v26 }
  0x35   :  { %579 = vmatpush3.msra.mxu0 %v84_v8  ;;  %614 = vmatprep.subr.mxu1 %v291_v27 }
  0x36   :  { %580 = vmatprep.subr.mxu0 %v83_v9  ;;  %615 = vmatpush3.msra.mxu1 %v291_v27 }
  0x37   :  { %581 = vmatpush3.msra.mxu0 %v83_v9  ;;  %616 = vmatprep.subr.mxu1 %v290_v28 }
  0x38   :  { %582 = vmatprep.subr.mxu0 %v82_v10  ;;  %617 = vmatpush3.msra.mxu1 %v290_v28 }
  0x39   :  { %583 = vmatpush3.msra.mxu0 %v82_v10  ;;  %618 = vmatprep.subr.mxu1 %v289_v29 }
  0x3a   :  { %584 = vmatprep.subr.mxu0 %v81_v11  ;;  %619 = vmatpush3.msra.mxu1 %v289_v29 }
  0x3b   :  { %585 = vmatpush3.msra.mxu0 %v81_v11  ;;  %620 = vmatprep.subr.mxu1 %v288_v30 }
  0x3c   :  { %586 = vmatprep.subr.mxu0 %v80_v12  ;;  %621 = vmatpush3.msra.mxu1 %v288_v30 }
  0x3d   :  { %587 = vmatpush3.msra.mxu0 %v80_v12  ;;  %622 = vmatprep.subr.mxu1 %v287_v31 }
  0x3e   :  { %588 = vmatprep.subr.mxu0 %v79_v13  ;;  %623 = vmatpush3.msra.mxu1 %v287_v31 }
  0x3f   :  { %589 = vmatpush3.msra.mxu0 %v79_v13  ;;  %624 = vmatprep.subr.mxu1 %v286_v32 }
  0x40   :  { %590 = vmatprep.subr.mxu0 %v78_v14  ;;  %625 = vmatpush3.msra.mxu1 %v286_v32  ;;  %v244_v32 = vlaneseq }
  0x41   :  { %591 = vmatpush3.msra.mxu0 %v78_v14  ;;  %626 = vmatprep.subr.mxu1 %v285_v33 }
  0x42   :  { %592 = vmatprep.subr.mxu0 %v77_v15  ;;  %627 = vmatpush3.msra.mxu1 %v285_v33  ;;  %v245_v33 = vshrl.u32 %v244_v32, 7 }
  0x43   :  { %593 = vmatpush3.msra.mxu0 %v77_v15  ;;  %628 = vmatprep.subr.mxu1 %v284_v34 }
  0x44   :  { %594 = vmatprep.subr.mxu0 %v76_v16  ;;  %629 = vmatpush3.msra.mxu1 %v284_v34  ;;  %v236_v34 = vld [vmem:[%s888_s2] sm:$0x1] }
  0x45   :  { %595 = vmatpush3.msra.mxu0 %v76_v16  ;;  %630 = vmatprep.subr.mxu1 %v283_v35 }
  0x46   :  { %597 = vmatmul.mubr.f32.vlgmr.msra.gmra.mxu0 %v815_v17  ;;  %631 = vmatpush3.msra.mxu1 %v283_v35  ;;  %v854_v35 = vsub.s32 0, %v245_v33 }
  0x47   :  { %599 = vmatprep.mubr.f32.mxu0 %v817_v18  ;;  %632 = vmatprep.subr.mxu1 %v282_v36 }
  0x48   :  { %633 = vmatpush3.msra.mxu1 %v282_v36 }
  0x49   :  { %634 = vmatprep.subr.mxu1 %v281_v37 }
  0x4a   :  { %600 = vmatmul.mubr.f32.gmra.mxu0 %v821_v19  ;;  %635 = vmatpush3.msra.mxu1 %v281_v37 }
  0x4b   :  { %602 = vmatprep.mubr.f32.mxu0 %v823_v20  ;;  %636 = vmatprep.subr.mxu1 %v280_v38 }
  0x4c   :  { %637 = vmatpush3.msra.mxu1 %v280_v38  ;;  %v240_v38 = vld [vmem:[%s889_s3] sm:$0x1] }
  0x4d   :  { %638 = vmatprep.subr.mxu1 %v279_v39 }
  0x4e   :  { %603 = vmatmul.mubr.f32.gmra.mxu0 %v827_v21  ;;  %639 = vmatpush3.msra.mxu1 %v279_v39 }
  0x4f   :  { %605 = vmatprep.mubr.f32.mxu0 %v829_v22 }
  0x52   :  { %606 = vmatmul.mubr.f32.gmra.mxu0 %v833_v23 }
 0x106   :  { %v598_v40 = vpop.f32.mrf.mxu0 }
 0x107   :  { %v212_v44 = vmul.f32 %v598_v40, %v598_v40 }
 0x108   :  { %v158_v41 = vpop.f32.mrf.mxu0 }
 0x109   :  { %v211_v42 = vmul.f32 %v158_v41, %v158_v41  ;;  %v197_v45 = vadd.f32 %v598_v40, %v158_v41 }
 0x10a   :  { %v836_v43 = vpop.f32.mrf.mxu0 }
 0x10b   :  { %v219_v47 = vadd.f32 %v212_v44, %v211_v42  ;;  %v214_v51 = vmul.f32 %v836_v43, %v836_v43 }
 0x10c   :  { %v168_v46 = vpop.f32.mrf.mxu0 }
 0x10d   :  { %v198_v48 = vadd.f32 %v197_v45, %v168_v46  ;;  %v213_v49 = vmul.f32 %v168_v46, %v168_v46 }
 0x10e   :  { %v838_v50 = vpop.f32.mrf.mxu0 }
 0x10f   :  { %v220_v52 = vadd.f32 %v219_v47, %v213_v49  ;;  %v199_v53 = vadd.f32 %v836_v43, %v198_v48  ;;  %v216_v59 = vmul.f32 %v838_v50, %v838_v50 }
 0x110   :  { %v178_v54 = vpop.f32.mrf.mxu0 }
 0x111   :  { %v200_v55 = vadd.f32 %v199_v53, %v178_v54  ;;  %v215_v56 = vmul.f32 %v178_v54, %v178_v54  ;;  %v221_v57 = vadd.f32 %v220_v52, %v214_v51 }
 0x112   :  { %v843_v58 = vpop.f32.mrf.mxu0 }
 0x113   :  { %v222_v60 = vadd.f32 %v221_v57, %v215_v56  ;;  %v201_v61 = vadd.f32 %v838_v50, %v200_v55  ;;  %v218_v2 = vmul.f32 %v843_v58, %v843_v58 }
 0x114   :  { %v188_v62 = vpop.f32.mrf.mxu0 }
 0x115   :  { %v202_v63 = vadd.f32 %v201_v61, %v188_v62  ;;  %v217_v0 = vmul.f32 %v188_v62, %v188_v62  ;;  %v223_v1 = vadd.f32 %v222_v60, %v216_v59 }
 0x117   :  { %v203_v3 = vadd.f32 %v843_v58, %v202_v63  ;;  %v224_v5 = vadd.f32 %v223_v1, %v217_v0 }
 0x119   :  { %v204_v6 = vrot.slane %v203_v3, 4  ;;  %v225_v7 = vadd.f32 %v224_v5, %v218_v2 }
 0x11b   :  { %v205_v8 = vadd.f32 %v204_v6, %v203_v3  ;;  %v226_v9 = vrot.slane %v225_v7, 4 }
 0x11d   :  { %v206_v10 = vrot.slane %v205_v8, 2  ;;  %v227_v11 = vadd.f32 %v226_v9, %v225_v7 }
 0x11f   :  { %v207_v12 = vadd.f32 %v206_v10, %v205_v8  ;;  %v228_v13 = vrot.slane %v227_v11, 2 }
 0x121   :  { %v208_v14 = vrot.slane %v207_v12, 1  ;;  %v229_v15 = vadd.f32 %v228_v13, %v227_v11 }
 0x123   :  { %v209_v16 = vadd.f32 %v208_v14, %v207_v12  ;;  %v230_v24 = vrot.slane %v229_v15, 1 }
 0x125   :  { %v210_v25 = vmul.f32 0.015625, %v209_v16  ;;  %v231_v26 = vadd.f32 %v230_v24, %v229_v15 }
 0x127   :  { %v232_v27 = vmul.f32 0.015625, %v231_v26  ;;  %v233_v28 = vmul.f32 %v210_v25, %v210_v25 }
 0x129   :  { %v234_v29 = vsub.f32 %v232_v27, %v233_v28 }
 0x12b   :  { %v235_v30 = vmax.f32 %v234_v29, 0.0 }
 0x12d   :  { %v237_v31 = vadd.f32 1e-05, %v235_v30 }
 0x12f   :  { %658 = vrsqrt.f32 %v237_v31 }
 0x13c   :  { %v659_v36 = vpop.eup %658 }
 0x13d   :  { %v239_v37 = vmul.f32 %v659_v36, %v236_v34 }
 0x13f   :  { %v241_v39 = vmul.f32 %v239_v37, %v210_v25  ;;  %v247_v42 = vrot.slane %v239_v37, %v854_v35 }
 0x141   :  { %v242_v44 = vsub.f32 %v240_v38, %v241_v39  ;;  %v249_v47 = vmul.f32 %v247_v42, %v158_v41  ;;  %v250_v48 = vmul.f32 %v598_v40, %v247_v42  ;;  %v251_v49 = vmul.f32 %v247_v42, %v168_v46 }
 0x142   :  { %v252_v55 = vmul.f32 %v836_v43, %v247_v42  ;;  %v253_v59 = vmul.f32 %v247_v42, %v178_v54  ;;  %v254_v0 = vmul.f32 %v838_v50, %v247_v42  ;;  %v255_v1 = vmul.f32 %v247_v42, %v188_v62 }
 0x143   :  { %v261_v45 = vrot.slane %v242_v44, %v854_v35  ;;  %v256_v3 = vmul.f32 %v843_v58, %v247_v42 }
 0x145   :  { %v263_v51 = vadd.f32 %v261_v45, %v249_v47  ;;  %v264_v52 = vadd.f32 %v261_v45, %v250_v48  ;;  %v265_v53 = vadd.f32 %v261_v45, %v251_v49  ;;  %v266_v60 = vadd.f32 %v261_v45, %v252_v55 }
 0x146   :  { %v267_v63 = vadd.f32 %v261_v45, %v253_v59  ;;  %v268_v40 = vadd.f32 %v261_v45, %v254_v0  ;;  %v269_v46 = vadd.f32 %v261_v45, %v255_v1  ;;  %v270_v5 = vadd.f32 %v261_v45, %v256_v3 }
 0x147   :  { %v271_v56 = vmax.f32 %v263_v51, 0.0  ;;  %v272_v57 = vmax.f32 %v264_v52, 0.0  ;;  %v273_v61 = vmax.f32 %v265_v53, 0.0  ;;  %v274_v41 = vmax.f32 %v266_v60, 0.0 }
 0x148   :  { %v275_v2 = vmax.f32 %v267_v63, 0.0  ;;  %v276_v43 = vmax.f32 %v268_v40, 0.0  ;;  %v277_v54 = vmax.f32 %v269_v46, 0.0  ;;  %v278_v6 = vmax.f32 %v270_v5, 0.0  ;;  %v439_v46 = vld [vmem:[%s891_s5] sm:$0x1] }
 0x149   :  { %640 = vmatprep.mubr.f32.mxu1 %v271_v56  ;;  %s753_s5 = smov [#allocation8]  }
 0x14a   :  { %641 = vmatmul.mubr.f32.vlgmr.msra.gmra.mxu1 %v272_v57 }
 0x14b   :  { %643 = vmatprep.mubr.f32.mxu1 %v273_v61 }
 0x14e   :  { %644 = vmatmul.mubr.f32.gmra.mxu1 %v274_v41 }
 0x14f   :  { %646 = vmatprep.mubr.f32.mxu1 %v275_v2 }
 0x152   :  { %647 = vmatmul.mubr.f32.gmra.mxu1 %v276_v43  ;;  %v443_v43 = vld [vmem:[%s892_s6] sm:$0x1]  ;;  %s503_s6 = sshll.u32 %s753_s5, 4  ;;  %s504_s6 = int_to_ptr.vmem [resolvable:$true] %s503_s6 }
 0x153   :  { %649 = vmatprep.mubr.f32.mxu1 %v277_v54  ;;  %s722_s21 = scalar_lea.vmem %s504_s6, 1024  ;;  %p727_p2 = scmp.lt.s32.totalorder %s504_s6, %s504_s6 }
 0x154   :  { %p723_p1 = scmp.ne.s32.totalorder %s504_s6, %s722_s21  ;;  %p728_p3 = scmp.lt.s32.totalorder %s722_s21, %s722_s21 }
 0x156   :  { %650 = vmatmul.mubr.f32.gmra.mxu1 %v278_v6  ;;  %p729_p4 = por %p728_p3, %p727_p2 }
 0x158   :  { %p730_p5 = pnand %p729_p4, %p723_p1 }
 0x20a   :  { %v642_v7 = vpop.f32.mrf.mxu1 }
 0x20b   :  { %v415_v9 = vmul.f32 %v642_v7, %v642_v7 }
 0x20c   :  { %v361_v8 = vpop.f32.mrf.mxu1 }
 0x20d   :  { %v414_v50 = vmul.f32 %v361_v8, %v361_v8  ;;  %v400_v10 = vadd.f32 %v642_v7, %v361_v8 }
 0x20e   :  { %v645_v62 = vpop.f32.mrf.mxu1 }
 0x20f   :  { %v422_v12 = vadd.f32 %v415_v9, %v414_v50  ;;  %v417_v58 = vmul.f32 %v645_v62, %v645_v62 }
 0x210   :  { %v371_v11 = vpop.f32.mrf.mxu1 }
 0x211   :  { %v401_v13 = vadd.f32 %v400_v10, %v371_v11  ;;  %v416_v14 = vmul.f32 %v371_v11, %v371_v11 }
 0x212   :  { %v648_v15 = vpop.f32.mrf.mxu1 }
 0x213   :  { %v423_v16 = vadd.f32 %v422_v12, %v416_v14  ;;  %v402_v24 = vadd.f32 %v645_v62, %v401_v13  ;;  %v419_v30 = vmul.f32 %v648_v15, %v648_v15 }
 0x214   :  { %v381_v25 = vpop.f32.mrf.mxu1 }
 0x215   :  { %v403_v26 = vadd.f32 %v402_v24, %v381_v25  ;;  %v418_v27 = vmul.f32 %v381_v25, %v381_v25  ;;  %v424_v28 = vadd.f32 %v423_v16, %v417_v58 }
 0x216   :  { %v651_v29 = vpop.f32.mrf.mxu1 }
 0x217   :  { %v425_v31 = vadd.f32 %v424_v28, %v418_v27  ;;  %v404_v32 = vadd.f32 %v648_v15, %v403_v26  ;;  %v421_v38 = vmul.f32 %v651_v29, %v651_v29 }
 0x218   :  { %v391_v33 = vpop.f32.mrf.mxu1 }
 0x219   :  { %v405_v34 = vadd.f32 %v404_v32, %v391_v33  ;;  %v420_v36 = vmul.f32 %v391_v33, %v391_v33  ;;  %v426_v37 = vadd.f32 %v425_v31, %v419_v30 }
 0x21b   :  { %v406_v39 = vadd.f32 %v651_v29, %v405_v34  ;;  %v427_v42 = vadd.f32 %v426_v37, %v420_v36 }
 0x21d   :  { %v407_v44 = vrot.slane %v406_v39, 4  ;;  %v428_v45 = vadd.f32 %v427_v42, %v421_v38 }
 0x21f   :  { %v408_v47 = vadd.f32 %v407_v44, %v406_v39  ;;  %v429_v48 = vrot.slane %v428_v45, 4 }
 0x221   :  { %v409_v49 = vrot.slane %v408_v47, 2  ;;  %v430_v51 = vadd.f32 %v429_v48, %v428_v45 }
 0x223   :  { %v410_v52 = vadd.f32 %v409_v49, %v408_v47  ;;  %v431_v53 = vrot.slane %v430_v51, 2 }
 0x225   :  { %v411_v55 = vrot.slane %v410_v52, 1  ;;  %v432_v56 = vadd.f32 %v431_v53, %v430_v51 }
 0x227   :  { %v412_v57 = vadd.f32 %v411_v55, %v410_v52  ;;  %v433_v59 = vrot.slane %v432_v56, 1 }
 0x229   :  { %v413_v60 = vmul.f32 0.015625, %v412_v57  ;;  %v434_v61 = vadd.f32 %v433_v59, %v432_v56 }
 0x22b   :  { %v435_v63 = vmul.f32 0.015625, %v434_v61  ;;  %v436_v0 = vmul.f32 %v413_v60, %v413_v60 }
 0x22d   :  { %v437_v1 = vsub.f32 %v435_v63, %v436_v0 }
 0x22f   :  { %v438_v41 = vmax.f32 %v437_v1, 0.0 }
 0x231   :  { %v440_v40 = vadd.f32 1e-05, %v438_v41 }
 0x233   :  { %660 = vrsqrt.f32 %v440_v40 }
 0x240   :  { %v661_v2 = vpop.eup %660 }
 0x241   :  { %v442_v3 = vmul.f32 %v661_v2, %v439_v46 }
 0x243   :  { %v444_v5 = vmul.f32 %v442_v3, %v413_v60  ;;  %v450_v54 = vrot.slane %v442_v3, %v854_v35 }
 0x245   :  { %v445_v6 = vsub.f32 %v443_v43, %v444_v5  ;;  %v458_v50 = vmul.f32 %v450_v54, %v391_v33  ;;  %v452_v9 = vmul.f32 %v450_v54, %v361_v8  ;;  %v453_v10 = vmul.f32 %v642_v7, %v450_v54 }
 0x246   :  { %v454_v12 = vmul.f32 %v450_v54, %v371_v11  ;;  %v455_v13 = vmul.f32 %v645_v62, %v450_v54  ;;  %v456_v14 = vmul.f32 %v450_v54, %v381_v25  ;;  %v457_v58 = vmul.f32 %v648_v15, %v450_v54 }
 0x247   :  { %v466_v16 = vadd.f32 %v458_v50, %v829_v22  ;;  %v472_v24 = vrot.slane %v445_v6, %v854_v35  ;;  %v459_v26 = vmul.f32 %v651_v29, %v450_v54  ;;  %v460_v27 = vadd.f32 %v452_v9, %v812_v4 }
 0x248   :  { %v461_v28 = vadd.f32 %v453_v10, %v815_v17  ;;  %v462_v30 = vadd.f32 %v454_v12, %v817_v18  ;;  %v463_v31 = vadd.f32 %v455_v13, %v821_v19  ;;  %v464_v8 = vadd.f32 %v456_v14, %v823_v20 }
 0x249   :  { %v480_v7 = vadd.f32 %v472_v24, %v466_v16  ;;  %v465_v62 = vadd.f32 %v457_v58, %v827_v21  ;;  %v467_v11 = vadd.f32 %v459_v26, %v833_v23  ;;  %v474_v15 = vadd.f32 %v472_v24, %v460_v27 }
 0x24a   :  { %v475_v22 = vadd.f32 %v472_v24, %v461_v28  ;;  %v476_v25 = vadd.f32 %v472_v24, %v462_v30  ;;  %v477_v35 = vadd.f32 %v472_v24, %v463_v31  ;;  %v478_v29 = vadd.f32 %v472_v24, %v464_v8 }
 0x24b   :  { %v488_v4 = vmax.f32 %v480_v7, 0.0  ;;  %v479_v17 = vadd.f32 %v472_v24, %v465_v62  ;;  %v481_v32 = vadd.f32 %v472_v24, %v467_v11  ;;  %v482_v18 = vmax.f32 %v474_v15, 0.0 }
 0x24c   :  { %v483_v33 = vmax.f32 %v475_v22, 0.0  ;;  %v484_v19 = vmax.f32 %v476_v25, 0.0  ;;  %v485_v34 = vmax.f32 %v477_v35, 0.0  ;;  %v486_v20 = vmax.f32 %v478_v29, 0.0 }
 0x24d   :  { %496 = vst [vmem:[#allocation8 + $0x30] sm:$0xff] %v488_v4  ;;  %v487_v36 = vmax.f32 %v479_v17, 0.0  ;;  %v489_v21 = vmax.f32 %v481_v32, 0.0  ;;  %490 = vst [vmem:[#allocation8] sm:$0xff] %v482_v18 }
 0x24e   :  { %491 = vst [vmem:[#allocation8 + $0x8] sm:$0xff] %v483_v33  ;;  %492 = vst [vmem:[#allocation8 + $0x10] sm:$0xff] %v484_v19 }
 0x24f   :  { %493 = vst [vmem:[#allocation8 + $0x18] sm:$0xff] %v485_v34  ;;  %494 = vst [vmem:[#allocation8 + $0x20] sm:$0xff] %v486_v20 }
 0x250   :  { %495 = vst [vmem:[#allocation8 + $0x28] sm:$0xff] %v487_v36  ;;  %497 = vst [vmem:[#allocation8 + $0x38] sm:$0xff] %v489_v21 }
 0x251   :  { %733 = shalt.err (!%p730_p5)
}
 0x252   :  { %509 = dma.vmem_to_hbm [thread:$0]  %s504_s6, 1024, %s893_s7, [#allocation4], %s750_s29, %s750_s29, %s751_s30  }
 0x253   :  { %746 = dma.done.wait [#allocation4], 1024  }
 0x254   :  { %747 = vsyncadd [#allocation4], 4294966272 }
 0x255   :  { %513 = vsyncpa [#allocation3], 1 }
 0x256   :  { %514 = vsyncpa [#allocation6], 1 }
 0x257   :  { %515 = vsyncpa [#allocation4], 1 }

</bundles_post_ra>
